<compile_context>
chip_gen: v6e
topology: v6e:2x2x1
jax: 0.10.0
libtpu: 0.0.40
codegen_flags: <defaults>
</compile_context>

<pallas_src>
import functools

import jax
import jax.numpy as jnp
from jax.experimental import pallas as pl
from jax.experimental.pallas import tpu as pltpu


def _round_up(x, m):
    return (x + m - 1) // m * m


def _pick_batch_tile(B, batch_tile):
    """Lane-axis (batch) tile.

    Small batches: a single full-width block (full-dim exemption from the
    128-lane divisibility rule).  Large batches: a multiple of 128, capped so
    the grid has >= 4 steps (pipelining + v7x megacore sharding via
    dimension_semantics=("parallel",)).
    """
    if B <= 512:
        return B
    tb = min(int(batch_tile), _round_up(pl.cdiv(B, 4), 128))
    return max(128, tb)


def _reward_reinf_kernel(im_ref, tv_ref, ps_ref, wt_ref, bsl_ref, out_ref, *,
                         n_tools, n_choices, min_r, norm_r):
    """Per batch-tile reward + REINFORCE loss (batch on the lane axis).

    im_ref  (Df, TB)            fruit feature vectors (batch on lanes)
    tv_ref  (n_tools*Dt, TB)    tool vectors, tool-major on sublanes
    ps_ref  (n_prop+4, TB)      [proposal rows | 1/mean, max_r, log_pprop, log_psent]
    wt_ref  (Dt, Df)            W.T with W = M_fruit @ M.T @ M_tool.T (precomputed)
    bsl_ref (1, 1) SMEM         baseline bias + 1.0
    out_ref (4, TB)             rows = [loss, loss_baseline, rewards, normed]
    """
    Dt = wt_ref.shape[0]
    n_prop = ps_ref.shape[0] - 4

    ps = ps_ref[...]
    share = ps[0:1, :]                                     # (1, TB)
    agreed = 1.0 - ps[n_choices:n_choices + 1, :]          # (1, TB)

    # chosen_tools_vectors[d, b] = sum_t choice[t, b] * tool_vectors[t, b, d]
    tv = tv_ref[...]
    chosen = ps[1:2, :] * tv[0:Dt, :]
    for t in range(1, n_tools):                            # static unroll (small)
        chosen = chosen + ps[1 + t:2 + t, :] * tv[t * Dt:(t + 1) * Dt, :]

    # Bilinear reward collapsed to one MXU matmul; lane-dense (Dt, TB) result.
    imw = jnp.dot(wt_ref[...], im_ref[...], preferred_element_type=jnp.float32)

    inv_mean = ps[n_prop:n_prop + 1, :]
    maxr = ps[n_prop + 1:n_prop + 2, :]
    logpp = ps[n_prop + 2:n_prop + 3, :]
    logps = ps[n_prop + 3:n_prop + 4, :]

    # Sublane reduce over Dt; divides replaced with multiplies.
    rewards_both = (jnp.sum(imw * chosen, axis=0, keepdims=True) + min_r) * inv_mean
    rewards = share * rewards_both                          # (1, TB)

    pos = maxr != 0.0
    safe_max = jnp.where(pos, maxr, 1.0)
    if norm_r == 2:
        # Exact-equality semantics downstream: keep a true divide so
        # `normed == 1.0` can actually fire when rewards == max_rewards.
        normed = jnp.where(pos, rewards / safe_max, 1.0)
    else:
        normed = jnp.where(pos, rewards * pl.reciprocal(safe_max, approx=True), 1.0)

    if norm_r == 1:
        rewards = normed
    elif norm_r == 2:
        # NOTE: exact float equality mirrors the PyTorch original (fragile).
        rewards = normed * (normed == 1.0).astype(rewards.dtype)

    rewards = rewards * agreed
    normed = normed * agreed

    # Baseline + REINFORCE losses (training branch of forward).
    bsl = bsl_ref[0, 0]                                     # already bias + 1.0
    adv = rewards - bsl
    out_ref[0:1, :] = -adv * (logpp + logps)                # loss
    out_ref[1:2, :] = (bsl - rewards) * (bsl - rewards)     # loss_baseline (MSE)
    out_ref[2:3, :] = rewards
    out_ref[3:4, :] = normed


def reward_reinf_forward(im_vectors, tool_vectors, proposal, inv_mean_b,
                         max_rewards, log_pprop, log_psent, Wt, bsl_plus_one,
                         *, n_tools, n_choices, min_r, norm_r,
                         batch_tile=8192):
    B, Df = im_vectors.shape
    Dt = Wt.shape[0]
    n_prop = proposal.shape[1]                              # n_choices + 1
    f32 = lambda x: jnp.asarray(x, jnp.float32)

    # Batch-on-lanes layout: (features, B) so every block is lane-dense.
    im_t = f32(im_vectors).T                                             # (Df, B)
    tv_t = jnp.transpose(f32(tool_vectors), (0, 2, 1)).reshape(n_tools * Dt, B)
    ps = jnp.concatenate([                                               # (n_prop+4, B)
        f32(proposal).T,
        f32(inv_mean_b).reshape(1, B),
        f32(max_rewards).reshape(1, B),
        f32(log_pprop).reshape(1, B),
        f32(log_psent).reshape(1, B)], axis=0)

    TB = _pick_batch_tile(B, batch_tile)
    n_blocks = pl.cdiv(B, TB)     # no jnp.pad: ragged last block masked by Pallas
    # TODO(synk): optionally stream im/tv as bf16 (cast on load) and sweep
    # pl.Buffered(3) on the two large streams once upstream numerics allow.

    kernel = functools.partial(_reward_reinf_kernel, n_tools=int(n_tools),
                               n_choices=int(n_choices), min_r=float(min_r),
                               norm_r=int(norm_r))

    out = pl.pallas_call(
        kernel,
        out_shape=jax.ShapeDtypeStruct((4, B), jnp.float32),
        grid=(n_blocks,),
        in_specs=[
            pl.BlockSpec((Df, TB), lambda i: (0, i)),
            pl.BlockSpec((n_tools * Dt, TB), lambda i: (0, i)),
            pl.BlockSpec((n_prop + 4, TB), lambda i: (0, i)),
            pl.BlockSpec((Dt, Df), lambda i: (0, 0)),               # W.T, resident
            pl.BlockSpec(memory_space=pltpu.MemorySpace.SMEM),      # baseline scalar
        ],
        out_specs=pl.BlockSpec((4, TB), lambda i: (0, i)),
        compiler_params=pltpu.CompilerParams(
            dimension_semantics=("parallel",),
            vmem_limit_bytes=32 * 1024 * 1024),
        cost_estimate=pl.CostEstimate(
            flops=2 * B * Df * Dt + B * (2 * n_tools * Dt + 24),
            transcendentals=B,
            bytes_accessed=4 * (B * (Df + n_tools * Dt + n_prop + 8)
                                + Dt * Df + 1)),
    )(im_t, tv_t, ps, f32(Wt), f32(bsl_plus_one).reshape(1, 1))

    return out[0], out[1], out[2], out[3]


class RewardAgentReinfPallas:
    """JAX/Pallas port of RewardAgentReinf (training-mode forward)."""

    def __init__(self, MappingMatrix, M_tool, M_fruit, agent_id, n_tools,
                 n_choices, norm_r=0, min_r=0.1):
        self.M = jnp.asarray(MappingMatrix, jnp.float32)
        self.M_tool = jnp.asarray(M_tool, jnp.float32)
        self.M_fruit = jnp.asarray(M_fruit, jnp.float32)
        # Collapsed bilinear weight (im @ M_fruit @ M.T @ M_tool.T @ chosen.T),
        # stored pre-transposed (Dt, Df) so the kernel's single matmul yields a
        # lane-dense (Dt, TB) result. Recompute if M / M_tool / M_fruit change.
        self.Wt = (self.M_fruit @ self.M.T @ self.M_tool.T).T
        self.agent_id = agent_id
        self.n_tools = n_tools
        self.n_choices = n_choices
        self.norm_r = norm_r
        self.min_r = min_r
        # Baseline(): bias = ones(1)
        self.baseline_bias = jnp.ones((1,), jnp.float32)
        self.training = True
        self.complete_reward_mean = None

    # One-time setup (matches RewardAgent.normalise_rewards) -- plain JAX glue.
    def normalise_rewards(self, fruits_properties, tools_properties, norm=True):
        pf = jnp.asarray(fruits_properties, jnp.float32) @ self.M_fruit
        pt = jnp.asarray(tools_properties, jnp.float32) @ self.M_tool
        rewards = pf @ (self.M.T @ pt.T) + self.min_r       # (n_cat_fruits, n_cat_tools)
        if norm:
            self.complete_reward_mean = rewards.mean(axis=0)          # (n_cat_tools,)
        else:
            self.complete_reward_mean = jnp.ones_like(rewards.mean(axis=0))
        return rewards

    def forward(self, im_vectors, tool_vectors, tools_labels, proposal,
                log_pprop, log_psent, max_rewards):
        B = im_vectors.shape[0]
        # TODO(synk): data-dependent per-batch label gather stays in plain JAX;
        # tools_idx uses column-1 *value* of the one-hot as an index, exactly
        # as the PyTorch source does.  Reciprocal taken here so the kernel
        # only multiplies.
        tool_choice = proposal[:, 1:self.n_tools + 1]
        tools_idx = tool_choice[:, 1].astype(jnp.int32)
        labels = tools_labels.T[jnp.arange(B), tools_idx].astype(jnp.int32)
        inv_mean_b = 1.0 / self.complete_reward_mean[labels]          # (B,)

        loss, loss_baseline, rewards, normed = reward_reinf_forward(
            im_vectors, tool_vectors, proposal, inv_mean_b, max_rewards,
            log_pprop, log_psent, self.Wt, self.baseline_bias + 1.0,
            n_tools=self.n_tools, n_choices=self.n_choices,
            min_r=self.min_r, norm_r=self.norm_r)

        if self.training:
            return loss, loss_baseline, rewards, normed
        # eval mode of the original module
        return rewards, normed


def _pure_jax_reference(agent, im_vectors, tool_vectors, tools_labels,
                        proposal, log_pprop, log_psent, max_rewards):
    B = im_vectors.shape[0]
    share = proposal[:, 0]
    tool_choice = proposal[:, 1:agent.n_tools + 1]
    agreed = 1.0 - proposal[:, agent.n_choices]
    chosen = jnp.einsum('tbd,bt->bd', tool_vectors, tool_choice)
    pf = im_vectors @ agent.M_fruit
    pt = chosen @ agent.M_tool
    mtd = agent.M.T @ pt.T                                         # (P, B)
    rb = jnp.sum(pf * mtd.T, axis=1) + agent.min_r
    tools_idx = tool_choice[:, 1].astype(jnp.int32)
    labels = tools_labels.T[jnp.arange(B), tools_idx].astype(jnp.int32)
    rb = rb / agent.complete_reward_mean[labels]
    rewards = share * rb
    pos = max_rewards != 0.0
    normed = jnp.where(pos, rewards / jnp.where(pos, max_rewards, 1.0), 1.0)
    if agent.norm_r == 1:
        rewards = normed
    elif agent.norm_r == 2:
        rewards = normed * (normed == 1.0).astype(rewards.dtype)
    rewards = rewards * agreed
    normed = normed * agreed
    bsl = agent.baseline_bias[0] + 1.0
    loss_baseline = (bsl - rewards) ** 2
    loss = -(rewards - bsl) * log_pprop - (rewards - bsl) * log_psent
    return loss, loss_baseline, rewards, normed


def _make_inputs(key, B, Df, Dt, n_tools, n_cat_tools):
    ks = jax.random.split(key, 9)
    im_vectors = jax.random.uniform(ks[0], (B, Df), jnp.float32)
    tool_vectors = jax.random.uniform(ks[1], (n_tools, B, Dt), jnp.float32)
    tools_labels = jax.random.randint(ks[2], (n_tools, B), 0,
                                      n_cat_tools).astype(jnp.float32)
    share = jax.random.uniform(ks[3], (B, 1), jnp.float32)
    choice_idx = jax.random.randint(ks[4], (B,), 0, n_tools)
    tool_choice = jax.nn.one_hot(choice_idx, n_tools, dtype=jnp.float32)
    agreement = jax.random.bernoulli(ks[5], 0.3, (B, 1)).astype(jnp.float32)
    proposal = jnp.concatenate([share, tool_choice, agreement], axis=1)
    log_pprop = jax.random.normal(ks[6], (B,), jnp.float32) - 1.0
    log_psent = jax.random.normal(ks[7], (B,), jnp.float32) - 1.0
    max_rewards = jax.random.uniform(ks[8], (B,), jnp.float32) + 0.5
    max_rewards = max_rewards * (jnp.arange(B) % 7 != 1)    # include zeros
    return (im_vectors, tool_vectors, tools_labels, proposal,
            log_pprop, log_psent, max_rewards)


if __name__ == "__main__":
    key = jax.random.PRNGKey(0)
    Df, Dt, P = 16, 16, 8
    n_tools = 3
    n_choices = n_tools + 1
    n_cat_fruits, n_cat_tools = 10, 6

    kp, k_small, k_big = jax.random.split(key, 3)
    ks = jax.random.split(kp, 5)
    M = jax.random.uniform(ks[0], (P, P), jnp.float32) * 0.5
    M_tool = jax.random.uniform(ks[1], (Dt, P), jnp.float32) * 0.5
    M_fruit = jax.random.uniform(ks[2], (Df, P), jnp.float32) * 0.5
    fruits_properties = jax.random.uniform(ks[3], (n_cat_fruits, Df), jnp.float32)
    tools_properties = jax.random.uniform(ks[4], (n_cat_tools, Dt), jnp.float32)

    agent = RewardAgentReinfPallas(M, M_tool, M_fruit, agent_id=0,
                                   n_tools=n_tools, n_choices=n_choices,
                                   norm_r=0, min_r=0.1)
    agent.normalise_rewards(fruits_properties, tools_properties, norm=True)

    # Test 1: tiny batch (single lane-block, TB == B, full-dim exemption).
    # Test 2: B=600 -> multi-block grid (TB=256, 3 steps, ragged last block).
    for kb, B in ((k_small, 4), (k_big, 600)):
        inputs = _make_inputs(kb, B, Df, Dt, n_tools, n_cat_tools)
        outs = agent.forward(*inputs)
        jax.block_until_ready(outs)
        refs = _pure_jax_reference(agent, *inputs)
        for got, ref in zip(outs, refs):
            assert got.shape == ref.shape, (B, got.shape, ref.shape)
            assert bool(jnp.allclose(got, ref, rtol=1e-2, atol=1e-2)), (B, got, ref)

    print("KERNEL_OK")
</pallas_src>

<mosaic_0001>
module attributes {stable_mosaic.version = 11 : i64} {
  func.func @_reward_reinf_kernel(%arg0: i32, %arg1: memref<16x4xf32, #tpu.memory_space<vmem>>, %arg2: memref<48x4xf32, #tpu.memory_space<vmem>>, %arg3: memref<9x4xf32, #tpu.memory_space<vmem>>, %arg4: memref<16x16xf32, #tpu.memory_space<vmem>>, %arg5: memref<1x1xf32, #tpu.memory_space<smem>>, %arg6: memref<4x4xf32, #tpu.memory_space<vmem>>) attributes {dimension_semantics = [#tpu.dimension_semantics<parallel>], iteration_bounds = array<i64: 1>, scalar_prefetch = 0 : i64, scratch_operands = 0 : i64, tpu.core_type = #tpu.core_type<tc>, window_params = [{transform_indices = @transform_0, window_bounds = array<i64: 16, 4>}, {transform_indices = @transform_1, window_bounds = array<i64: 48, 4>}, {transform_indices = @transform_2, window_bounds = array<i64: 9, 4>}, {pipeline_mode = #tpu.pipeline_mode<synchronous>, transform_indices = @transform_3, window_bounds = array<i64: 16, 16>}, {transform_indices = @transform_4, window_bounds = array<i64: 1, 1>}, {transform_indices = @transform_5, window_bounds = array<i64: 4, 4>}]} {
    %c0 = arith.constant 0 : index
    %c0_0 = arith.constant 0 : index
    %0 = vector.load %arg3[%c0, %c0_0] : memref<9x4xf32, #tpu.memory_space<vmem>>, vector<9x4xf32>
    %1 = vector.extract_strided_slice %0 {offsets = [0, 0], sizes = [1, 4], strides = [1, 1]} : vector<9x4xf32> to vector<1x4xf32>
    %2 = vector.extract_strided_slice %0 {offsets = [4, 0], sizes = [1, 4], strides = [1, 1]} : vector<9x4xf32> to vector<1x4xf32>
    %cst = arith.constant 1.000000e+00 : f32
    %3 = vector.broadcast %cst : f32 to vector<1x4xf32>
    %4 = arith.subf %3, %2 : vector<1x4xf32>
    %c0_1 = arith.constant 0 : index
    %c0_2 = arith.constant 0 : index
    %5 = vector.load %arg2[%c0_1, %c0_2] : memref<48x4xf32, #tpu.memory_space<vmem>>, vector<48x4xf32>
    %6 = vector.extract_strided_slice %0 {offsets = [1, 0], sizes = [1, 4], strides = [1, 1]} : vector<9x4xf32> to vector<1x4xf32>
    %7 = vector.extract_strided_slice %5 {offsets = [0, 0], sizes = [16, 4], strides = [1, 1]} : vector<48x4xf32> to vector<16x4xf32>
    %8 = vector.broadcast %6 : vector<1x4xf32> to vector<16x4xf32>
    %9 = arith.mulf %8, %7 : vector<16x4xf32>
    %10 = vector.extract_strided_slice %0 {offsets = [2, 0], sizes = [1, 4], strides = [1, 1]} : vector<9x4xf32> to vector<1x4xf32>
    %11 = vector.extract_strided_slice %5 {offsets = [16, 0], sizes = [16, 4], strides = [1, 1]} : vector<48x4xf32> to vector<16x4xf32>
    %12 = vector.broadcast %10 : vector<1x4xf32> to vector<16x4xf32>
    %13 = arith.mulf %12, %11 : vector<16x4xf32>
    %14 = arith.addf %9, %13 : vector<16x4xf32>
    %15 = vector.extract_strided_slice %0 {offsets = [3, 0], sizes = [1, 4], strides = [1, 1]} : vector<9x4xf32> to vector<1x4xf32>
    %16 = vector.extract_strided_slice %5 {offsets = [32, 0], sizes = [16, 4], strides = [1, 1]} : vector<48x4xf32> to vector<16x4xf32>
    %17 = vector.broadcast %15 : vector<1x4xf32> to vector<16x4xf32>
    %18 = arith.mulf %17, %16 : vector<16x4xf32>
    %19 = arith.addf %14, %18 : vector<16x4xf32>
    %c0_3 = arith.constant 0 : index
    %c0_4 = arith.constant 0 : index
    %20 = vector.load %arg4[%c0_3, %c0_4] : memref<16x16xf32, #tpu.memory_space<vmem>>, vector<16x16xf32>
    %c0_5 = arith.constant 0 : index
    %c0_6 = arith.constant 0 : index
    %21 = vector.load %arg1[%c0_5, %c0_6] : memref<16x4xf32, #tpu.memory_space<vmem>>, vector<16x4xf32>
    %cst_7 = arith.constant dense<0.000000e+00> : vector<16x4xf32>
    %22 = tpu.matmul %20, %21, %cst_7 {dimension_numbers = #tpu.dot_dimension_numbers<[1], [0], [0], [1], [0, 0, 1, 1], [], []>} : vector<16x16xf32>, vector<16x4xf32>, vector<16x4xf32> -> vector<16x4xf32>
    %23 = vector.extract_strided_slice %0 {offsets = [5, 0], sizes = [1, 4], strides = [1, 1]} : vector<9x4xf32> to vector<1x4xf32>
    %24 = vector.extract_strided_slice %0 {offsets = [6, 0], sizes = [1, 4], strides = [1, 1]} : vector<9x4xf32> to vector<1x4xf32>
    %25 = vector.extract_strided_slice %0 {offsets = [7, 0], sizes = [1, 4], strides = [1, 1]} : vector<9x4xf32> to vector<1x4xf32>
    %26 = vector.extract_strided_slice %0 {offsets = [8, 0], sizes = [1, 4], strides = [1, 1]} : vector<9x4xf32> to vector<1x4xf32>
    %27 = arith.mulf %22, %19 : vector<16x4xf32>
    %cst_8 = arith.constant dense<0.000000e+00> : vector<4xf32>
    %28 = vector.multi_reduction <add>, %27, %cst_8 [0] : vector<16x4xf32> to vector<4xf32>
    %29 = vector.shape_cast %28 : vector<4xf32> to vector<1x4xf32>
    %cst_9 = arith.constant 1.000000e-01 : f32
    %30 = vector.broadcast %cst_9 : f32 to vector<1x4xf32>
    %31 = arith.addf %29, %30 : vector<1x4xf32>
    %32 = arith.mulf %31, %23 : vector<1x4xf32>
    %33 = arith.mulf %1, %32 : vector<1x4xf32>
    %cst_10 = arith.constant 0.000000e+00 : f32
    %34 = vector.broadcast %cst_10 : f32 to vector<1x4xf32>
    %35 = arith.cmpf one, %24, %34 : vector<1x4xf32>
    %cst_11 = arith.constant 1.000000e+00 : f32
    %36 = vector.broadcast %cst_11 : f32 to vector<1x4xf32>
    %37 = arith.select %35, %24, %36 : vector<1x4xi1>, vector<1x4xf32>
    %38 = tpu.reciprocal %37 {approx = true} : vector<1x4xf32> -> vector<1x4xf32>
    %39 = arith.mulf %33, %38 : vector<1x4xf32>
    %cst_12 = arith.constant 1.000000e+00 : f32
    %40 = vector.broadcast %cst_12 : f32 to vector<1x4xf32>
    %41 = arith.select %35, %39, %40 : vector<1x4xi1>, vector<1x4xf32>
    %42 = arith.mulf %33, %4 : vector<1x4xf32>
    %43 = arith.mulf %41, %4 : vector<1x4xf32>
    %c0_13 = arith.constant 0 : index
    %c0_14 = arith.constant 0 : index
    %44 = memref.load %arg5[%c0_13, %c0_14] : memref<1x1xf32, #tpu.memory_space<smem>>
    %45 = vector.broadcast %44 : f32 to vector<1x4xf32>
    %46 = arith.subf %42, %45 : vector<1x4xf32>
    %cst_15 = arith.constant 0.000000e+00 : f32
    %47 = vector.broadcast %cst_15 : f32 to vector<1x4xf32>
    %48 = arith.subf %47, %46 : vector<1x4xf32>
    %49 = arith.addf %25, %26 : vector<1x4xf32>
    %50 = arith.mulf %48, %49 : vector<1x4xf32>
    %c0_16 = arith.constant 0 : index
    %c0_17 = arith.constant 0 : index
    %51 = vector.load %arg6[%c0_16, %c0_17] : memref<4x4xf32, #tpu.memory_space<vmem>>, vector<1x4xf32>
    tpu.vector_store %arg6[%c0_16, %c0_17], %50 {strides = array<i32>} : memref<4x4xf32, #tpu.memory_space<vmem>>, vector<1x4xf32>,
    %52 = vector.broadcast %44 : f32 to vector<1x4xf32>
    %53 = arith.subf %52, %42 : vector<1x4xf32>
    %54 = vector.broadcast %44 : f32 to vector<1x4xf32>
    %55 = arith.subf %54, %42 : vector<1x4xf32>
    %56 = arith.mulf %53, %55 : vector<1x4xf32>
    %c1 = arith.constant 1 : index
    %c0_18 = arith.constant 0 : index
    %57 = vector.load %arg6[%c1, %c0_18] : memref<4x4xf32, #tpu.memory_space<vmem>>, vector<1x4xf32>
    tpu.vector_store %arg6[%c1, %c0_18], %56 {strides = array<i32>} : memref<4x4xf32, #tpu.memory_space<vmem>>, vector<1x4xf32>,
    %c2 = arith.constant 2 : index
    %c0_19 = arith.constant 0 : index
    %58 = vector.load %arg6[%c2, %c0_19] : memref<4x4xf32, #tpu.memory_space<vmem>>, vector<1x4xf32>
    tpu.vector_store %arg6[%c2, %c0_19], %42 {strides = array<i32>} : memref<4x4xf32, #tpu.memory_space<vmem>>, vector<1x4xf32>,
    %c3 = arith.constant 3 : index
    %c0_20 = arith.constant 0 : index
    %59 = vector.load %arg6[%c3, %c0_20] : memref<4x4xf32, #tpu.memory_space<vmem>>, vector<1x4xf32>
    tpu.vector_store %arg6[%c3, %c0_20], %43 {strides = array<i32>} : memref<4x4xf32, #tpu.memory_space<vmem>>, vector<1x4xf32>,
    return
  }
  func.func @transform_0(%arg0: i32) -> (i32, i32) {
    %c0_i32 = arith.constant 0 : i32
    %c0_i32_0 = arith.constant 0 : i32
    return %c0_i32, %arg0 : i32, i32
  }
  func.func @transform_1(%arg0: i32) -> (i32, i32) {
    %c0_i32 = arith.constant 0 : i32
    %c0_i32_0 = arith.constant 0 : i32
    return %c0_i32, %arg0 : i32, i32
  }
  func.func @transform_2(%arg0: i32) -> (i32, i32) {
    %c0_i32 = arith.constant 0 : i32
    %c0_i32_0 = arith.constant 0 : i32
    return %c0_i32, %arg0 : i32, i32
  }
  func.func @transform_3(%arg0: i32) -> (i32, i32) {
    %c0_i32 = arith.constant 0 : i32
    %c0_i32_0 = arith.constant 0 : i32
    %c0_i32_1 = arith.constant 0 : i32
    return %c0_i32, %c0_i32_0 : i32, i32
  }
  func.func @transform_4(%arg0: i32) -> (i32, i32) {
    %c0_i32 = arith.constant 0 : i32
    %c0_i32_0 = arith.constant 0 : i32
    %c0_i32_1 = arith.constant 0 : i32
    return %c0_i32, %c0_i32_0 : i32, i32
  }
  func.func @transform_5(%arg0: i32) -> (i32, i32) {
    %c0_i32 = arith.constant 0 : i32
    %c0_i32_0 = arith.constant 0 : i32
    return %c0_i32, %arg0 : i32, i32
  }
}

</mosaic_0001>

<bundles_post_ra>
// kernel: tpu_custom_call.1
= control target key start
LH: loop header
LB: loop body
LE: loop exit
PB: predicated region body
PF: predicated region fallthrough
CT: control target
= control target key end

     0   :  { %vm57_vm0 = vcmask 130048   ;;  %s325_s0 = inlined_call_operand.vmem [shape: f32[16,4], index: 0, kind: input, shape index: {}]   ;;  %s326_s1 = inlined_call_operand.vmem [shape: f32[48,4], index: 1, kind: input, shape index: {}]   ;;  %s327_s2 = inlined_call_operand.vmem [shape: f32[9,4], index: 2, kind: input, shape index: {}]   ;;  %s328_s3 = inlined_call_operand.vmem [shape: f32[16,16], index: 3, kind: input, shape index: {}]   ;;  %s329_s4 = inlined_call_operand.<no memory space> [shape: f32[1,1], index: 4, kind: input, shape index: {}]   ;;  %s330_s5 = inlined_call_operand.hbm [shape: f32[4,4], index: 5, kind: output, shape index: {}]  }
   0x1   :  { %v56_v0 = vld [vmem:[%s325_s0 + $0x8] sm:$0xff]  ;;  %v55_v1 = vld [vmem:[%s325_s0] sm:$0xff] }
   0x2   :  { %v53_v2 = vld [vmem:[%s328_s3] sm:$0xff]  ;;  %215 = vmatprep.subr.mxu0 %v56_v0  ;;  %v54_v3 = vld [vmem:[%s328_s3 + $0x8] sm:$0xff] }
   0x3   :  { %219 = vmatprep.mubr.msk.f32.mxu0 %vm57_vm0, %v53_v2  ;;  %216 = vmatpush3.msra.mxu0 %v56_v0 }
   0x4   :  { %11 = vsyncpa [#allocation4], 0  ;;  %217 = vmatprep.subr.mxu0 %v55_v1  ;;  %v31_v4 = vlaneseq  ;;  %v22_v8 = vld [vmem:[%s327_s2] sm:$0xff]  ;;  %v26_v12 = vld [vmem:[%s326_s1 + $0x8] sm:$0xff]  ;;  %vm141_vm1 = vcmask 31744   ;;  %v176_v54 = vstv %s329_s4  ;;  %vm187_vm3 = vcmask 24576  }
   0x5   :  { %218 = vmatpush3.msra.mxu0 %v55_v1  ;;  %v28_v13 = vld [vmem:[%s326_s1 + $0x18] sm:$0xff]  ;;  %v25_v14 = vld [vmem:[%s326_s1] sm:$0xff]  ;;  %v27_v15 = vld [vmem:[%s326_s1 + $0x10] sm:$0xff]  ;;  %vm157_vm2 = vcmp.ne.f32.partialorder %v22_v8, 0.0  ;;  %v24_v45 = vsub.f32 1.0, %v22_v8  ;;  %vm193_vm4 = vcmask 30726  }
   0x6   :  { %220 = vmatmul.mubr.msk.f32.vlgmr.msra.gmra.mxu0 %vm57_vm0, %v54_v3  ;;  %v32_v5 = vshrl.u32 %v31_v4, 7  ;;  %v30_v19 = vld [vmem:[%s326_s1 + $0x28] sm:$0xff]  ;;  %v29_v22 = vld [vmem:[%s326_s1 + $0x20] sm:$0xff]  ;;  %v158_v35 = vsel %vm157_vm2, %v22_v8, 1.0 }
   0x7   :  { %223 = vrcp.f32 %v158_v35  ;;  %v23_v43 = vld [vmem:[%s327_s2 + $0x8] sm:$0x1]  ;;  %v169_v51 = vrot.slane %v24_v45, 4  ;;  %v172_v57 = vrot.slane %v24_v45, 6  ;;  %s247_s2 = smov [#allocation3]  }
   0x8   :  { %v33_v6 = vsub.s32 1, %v32_v5  ;;  %v39_v7 = vsub.s32 2, %v32_v5  ;;  %v47_v11 = vsub.s32 3, %v32_v5  ;;  %v180_v48 = vrot.slane %v23_v43, 1  ;;  %s201_s16 = sshll.u32 %s247_s2, 4  ;;  %s202_s16 = int_to_ptr.vmem [resolvable:$true] %s201_s16 }
   0x9   :  { %s225_s4 = scalar_lea.vmem %s202_s16, 64  ;;  %p230_p1 = scmp.lt.s32.totalorder %s202_s16, %s202_s16 }
   0xa   :  { %v34_v9 = vrot.slane %v22_v8, %v33_v6  ;;  %v40_v10 = vrot.slane %v22_v8, %v39_v7  ;;  %v48_v18 = vrot.slane %v22_v8, %v47_v11  ;;  %v182_v53 = vadd.f32 %v180_v48, %v22_v8  ;;  %p226_p0 = scmp.ne.s32.totalorder %s202_s16, %s225_s4  ;;  %p231_p2 = scmp.lt.s32.totalorder %s225_s4, %s225_s4 }
   0xc   :  { %v36_v16 = vmul.f32 %v34_v9, %v26_v12  ;;  %v42_v17 = vmul.f32 %v40_v10, %v28_v13  ;;  %v35_v20 = vmul.f32 %v34_v9, %v25_v14  ;;  %v41_v21 = vmul.f32 %v40_v10, %v27_v15  ;;  %p232_p3 = por %p231_p2, %p230_p1 }
   0xd   :  { %v50_v24 = vmul.f32 %v48_v18, %v30_v19  ;;  %v49_v26 = vmul.f32 %v48_v18, %v29_v22  ;;  %v184_v60 = vrot.slane %v182_v53, 7 }
   0xe   :  { %v44_v23 = vadd.f32 %v42_v17, %v36_v16  ;;  %v43_v25 = vadd.f32 %v41_v21, %v35_v20  ;;  %p233_p4 = pnand %p232_p3, %p226_p0 }
  0x10   :  { %v52_v27 = vadd.f32 %v50_v24, %v44_v23  ;;  %v51_v28 = vadd.f32 %v49_v26, %v43_v25 }
  0x14   :  { %v224_v46 = vpop.eup %223 }
  0x15   :  { %v161_v50 = vrot.slane %v224_v46, 6 }
  0xc6   :  { %v221_v29 = vpop.f32.mrf.mxu0 }
  0xc7   :  { %v140_v30 = vmul.f32 %v221_v29, %v52_v27 }
  0xc8   :  { %v130_v31 = vpop.f32.mrf.mxu0 }
  0xc9   :  { %v139_v32 = vmul.f32 %v130_v31, %v51_v28  ;;  %v143_v33 = vsel %vm141_vm1, %v140_v30, 0.0 }
  0xcb   :  { %v142_v34 = vsel %vm141_vm1, %v139_v32, 0.0 }
  0xcc   :  { %v144_v36 = vadd.f32 %v143_v33, %v142_v34 }
  0xce   :  { %v145_v37 = vrot.slane %v144_v36, 4 }
  0xd0   :  { %v146_v38 = vadd.f32 %v145_v37, %v144_v36 }
  0xd2   :  { %v147_v39 = vrot.slane %v146_v38, 2 }
  0xd4   :  { %v148_v40 = vadd.f32 %v147_v39, %v146_v38 }
  0xd6   :  { %v149_v41 = vrot.slane %v148_v40, 1 }
  0xd8   :  { %v150_v42 = vadd.f32 %v149_v41, %v148_v40 }
  0xda   :  { %v151_v44 = vadd.f32 0.1, %v150_v42 }
  0xdc   :  { %v152_v47 = vmul.f32 %v151_v44, %v22_v8 }
  0xde   :  { %v154_v49 = vrot.slane %v152_v47, 5 }
  0xe0   :  { %v156_v52 = vmul.f32 %v154_v49, %v22_v8 }
  0xe2   :  { %v163_v55 = vmul.f32 %v161_v50, %v156_v52  ;;  %v171_v56 = vmul.f32 %v169_v51, %v156_v52 }
  0xe4   :  { %v165_v58 = vrot.slane %v163_v55, 2  ;;  %v177_v59 = vsub.f32 %v171_v56, %v176_v54  ;;  %v189_v61 = vsub.f32 %v176_v54, %v171_v56  ;;  %192 = vst.msk [vmem:[#allocation3 + $0x2] sm:$0x1] %vm187_vm3, %v171_v56 }
  0xe6   :  { %v167_v62 = vsel %vm157_vm2, %v165_v58, 1.0  ;;  %v178_v63 = vsub.f32 0.0, %v177_v59  ;;  %v190_v0 = vmul.f32 %v189_v61, %v189_v61 }
  0xe7   :  { %v174_v1 = vmul.f32 %v172_v57, %v167_v62 }
  0xe8   :  { %v186_v2 = vmul.f32 %v184_v60, %v178_v63  ;;  %191 = vst.msk [vmem:[#allocation3 + $0x1] sm:$0x1] %vm187_vm3, %v190_v0 }
  0xe9   :  { %194 = vst.msk [vmem:[#allocation3 - $0x3] sm:$0x40] %vm193_vm4, %v174_v1 }
  0xea   :  { %188 = vst.msk [vmem:[#allocation3] sm:$0x1] %vm187_vm3, %v186_v2 }
  0xeb   :  { %236 = shalt.err (!%p233_p4)
}
  0xec   :  { %204 = dma.vmem_to_hbm [thread:$0]  %s202_s16, 64, %s330_s5, [#allocation4]  }
  0xed   :  { %245 = dma.done.wait [#allocation4], 64  }
  0xee   :  { %246 = vsyncadd [#allocation4], 4294967232 }
  0xef   :  { %208 = vsyncpa [#allocation4], 1 }

</bundles_post_ra>
